<compile_context>
chip_gen: v7x
topology: tpu7x:2x2x1
jax: 0.10.0
libtpu: 0.0.40
codegen_flags: <defaults>
</compile_context>

<pallas_src>
import functools
import math

import numpy as np

import jax
import jax.numpy as jnp
from jax.experimental import pallas as pl
from jax.experimental.pallas import tpu as pltpu


def _round_up(x, m):
    return (x + m - 1) // m * m


# ---------------------------------------------------------------------------
# in-kernel math helpers
# ---------------------------------------------------------------------------
def _erf(x):
    # Abramowitz & Stegun 7.1.26 rational approximation, |err| < 1.5e-7.
    p = 0.3275911
    a1, a2, a3, a4, a5 = (0.254829592, -0.284496736, 1.421413741,
                          -1.453152027, 1.061405429)
    ax = jnp.abs(x)
    t = 1.0 / (1.0 + p * ax)
    poly = ((((a5 * t + a4) * t + a3) * t + a2) * t + a1) * t
    e = 1.0 - poly * jnp.exp(-ax * ax)
    return jnp.where(x >= 0, e, -e)


def _gelu(x):
    # exact (erf-based) GELU, as used by nn.GELU() / F.gelu default (f32 math).
    return 0.5 * x * (1.0 + _erf(x * 0.7071067811865476))


# ---------------------------------------------------------------------------
# fused conv3x3 + GroupNorm(1) (+ GELU / residual-GELU / time-emb) kernel
# ---------------------------------------------------------------------------
def _make_conv_kernel(H, W, apply_gelu, has_res, has_emb, eps=1e-5):
    def kernel(*refs):
        idx = 0
        x_ref = refs[idx]; idx += 1
        w_ref = refs[idx]; idx += 1
        g_ref = refs[idx]; idx += 1
        b_ref = refs[idx]; idx += 1
        res_ref = None
        emb_ref = None
        if has_res:
            res_ref = refs[idx]; idx += 1
        if has_emb:
            emb_ref = refs[idx]; idx += 1
        o_ref = refs[idx]; idx += 1
        pad_ref = refs[idx]                      # VMEM scratch (H+2, W+2, Cin)

        Cin = x_ref.shape[-1]
        Cout = w_ref.shape[-1]

        # --- stage the 1-px zero halo in VMEM (input stays unpadded in HBM) --
        xf = x_ref[0].astype(jnp.float32)                       # (H, W, Cin)
        zcol = jnp.zeros((H, 1, Cin), jnp.float32)
        zrow = jnp.zeros((W + 2, Cin), jnp.float32)
        pad_ref[0] = zrow
        pad_ref[H + 1] = zrow
        # store offsets only on the (un-tiled) leading dim -> plain stores
        pad_ref[1:H + 1, :, :] = jnp.concatenate([zcol, xf, zcol], axis=1)

        # --- 9-tap accumulation: 3 dw-shifted buffers, reused across dh ------
        acc = jnp.zeros((H * W, Cout), jnp.float32)
        for dw in range(3):
            col = pad_ref[:, dw:dw + W, :].astype(jnp.bfloat16)  # one relayout
            col = col.reshape((H + 2) * W, Cin)
            for dh in range(3):
                patch = col[dh * W:(dh + H) * W, :]              # row slice
                acc = acc + jnp.dot(patch, w_ref[dh * 3 + dw],
                                    preferred_element_type=jnp.float32)

        # --- GroupNorm(num_groups=1): normalize over all of (H, W, Cout) -----
        inv_n = 1.0 / float(H * W * Cout)
        s = jnp.sum(acc, axis=1, keepdims=True)
        mu = jnp.sum(s, axis=0, keepdims=True) * inv_n
        d = acc - mu
        s2 = jnp.sum(d * d, axis=1, keepdims=True)
        var = jnp.sum(s2, axis=0, keepdims=True) * inv_n
        y = d * jax.lax.rsqrt(var + eps)
        y = y * g_ref[...] + b_ref[...]          # per-channel affine (f32)

        if apply_gelu:                           # first conv of DoubleConv
            y = _gelu(y)
        if has_res:                              # residual DoubleConv epilogue
            y = _gelu(res_ref[0].reshape(H * W, Cout).astype(jnp.float32) + y)
        if has_emb:                              # Down/Up time-embedding add
            y = y + emb_ref[0].astype(jnp.float32)

        o_ref[0] = y.reshape(H, W, Cout).astype(o_ref.dtype)

    return kernel


@functools.partial(jax.jit, static_argnames=("apply_gelu",))
def conv3x3_gn(x, w9, gamma, beta, res=None, emb=None, apply_gelu=False):
    """Conv2d(3x3, pad=1, no bias) + GroupNorm(1) fused, NHWC bf16 in/out.

    x: (B,H,W,Cin) bf16; w9: (9,Cin,Cout) bf16; gamma/beta: (Cout,) f32;
    res: optional (B,H,W,Cout) residual (out = gelu(res + gn(conv(x))));
    emb: optional (B,Cout) time embedding added after GN.
    """
    B, H, W, Cin = x.shape
    Cout = w9.shape[-1]

    kern = _make_conv_kernel(H, W, apply_gelu, res is not None, emb is not None)
    inputs = [x, w9, gamma.reshape(1, Cout), beta.reshape(1, Cout)]
    in_specs = [
        pl.BlockSpec((1, H, W, Cin), lambda b: (b, 0, 0, 0)),
        pl.BlockSpec((9, Cin, Cout), lambda b: (0, 0, 0)),
        pl.BlockSpec((1, Cout), lambda b: (0, 0)),
        pl.BlockSpec((1, Cout), lambda b: (0, 0)),
    ]
    if res is not None:
        inputs.append(res)
        in_specs.append(pl.BlockSpec((1, H, W, Cout), lambda b: (b, 0, 0, 0)))
    if emb is not None:
        inputs.append(emb.reshape(B, 1, Cout))
        in_specs.append(pl.BlockSpec((1, 1, Cout), lambda b: (b, 0, 0)))

    return pl.pallas_call(
        kern,
        out_shape=jax.ShapeDtypeStruct((B, H, W, Cout), jnp.bfloat16),
        grid=(B,),
        in_specs=in_specs,
        out_specs=pl.BlockSpec((1, H, W, Cout), lambda b: (b, 0, 0, 0)),
        scratch_shapes=[pltpu.VMEM((H + 2, W + 2, Cin), jnp.float32)],
        compiler_params=pltpu.CompilerParams(
            dimension_semantics=("parallel",),
            vmem_limit_bytes=48 * 1024 * 1024),   # safe for v7x's 64 MiB VMEM
    )(*inputs)


# ---------------------------------------------------------------------------
# fused linear: (optional LayerNorm) -> matmul + bias -> (gelu) -> (+residual)
# ---------------------------------------------------------------------------
def _make_linear_kernel(act, has_res, has_ln, eps=1e-5):
    def kernel(*refs):
        idx = 0
        x_ref = refs[idx]; idx += 1
        w_ref = refs[idx]; idx += 1
        b_ref = refs[idx]; idx += 1
        g_ref = bln_ref = res_ref = None
        if has_ln:
            g_ref = refs[idx]; bln_ref = refs[idx + 1]; idx += 2
        if has_res:
            res_ref = refs[idx]; idx += 1
        o_ref = refs[idx]

        if has_ln:                               # fused LayerNorm (f32 stats)
            xf = x_ref[...].astype(jnp.float32)
            mu = jnp.mean(xf, axis=-1, keepdims=True)
            d = xf - mu
            var = jnp.mean(d * d, axis=-1, keepdims=True)
            xn = d * jax.lax.rsqrt(var + eps) * g_ref[...] + bln_ref[...]
            xm = xn.astype(jnp.bfloat16)
        else:
            xm = x_ref[...].astype(jnp.bfloat16)

        y = jnp.dot(xm, w_ref[...], preferred_element_type=jnp.float32)
        y = y + b_ref[...].astype(jnp.float32)
        if act == "gelu":
            y = _gelu(y)
        if has_res:
            y = y + res_ref[...].astype(jnp.float32)
        o_ref[...] = y.astype(o_ref.dtype)

    return kernel


@functools.partial(jax.jit, static_argnames=("act", "out_dtype"))
def pallas_linear(x2d, w, b, res=None, ln_g=None, ln_b=None, act=None,
                  out_dtype=jnp.bfloat16):
    """y = act(LN?(x) @ w + b) (+ res). w is pre-transposed (in, out) bf16."""
    M, K = x2d.shape
    N = w.shape[1]
    tm = 256 if M >= 256 else _round_up(M, 8)
    Mp = _round_up(M, tm)
    xp = x2d if Mp == M else jnp.pad(x2d, ((0, Mp - M), (0, 0)))

    has_ln = ln_g is not None
    has_res = res is not None

    inputs = [xp, w, b.reshape(1, N)]
    in_specs = [
        pl.BlockSpec((tm, K), lambda i: (i, 0)),
        pl.BlockSpec((K, N), lambda i: (0, 0)),     # weight resident
        pl.BlockSpec((1, N), lambda i: (0, 0)),
    ]
    if has_ln:
        inputs += [ln_g.reshape(1, K), ln_b.reshape(1, K)]
        in_specs += [pl.BlockSpec((1, K), lambda i: (0, 0)),
                     pl.BlockSpec((1, K), lambda i: (0, 0))]
    if has_res:
        rp = res if Mp == M else jnp.pad(res, ((0, Mp - M), (0, 0)))
        inputs.append(rp)
        in_specs.append(pl.BlockSpec((tm, N), lambda i: (i, 0)))

    out = pl.pallas_call(
        _make_linear_kernel(act, has_res, has_ln),
        out_shape=jax.ShapeDtypeStruct((Mp, N), out_dtype),
        grid=(Mp // tm,),
        in_specs=in_specs,
        out_specs=pl.BlockSpec((tm, N), lambda i: (i, 0)),
        compiler_params=pltpu.CompilerParams(
            dimension_semantics=("parallel",)),
    )(*inputs)
    return out[:M]


# ---------------------------------------------------------------------------
# fused LayerNorm + qkv projection with split (q, kv) lane-dense outputs
# ---------------------------------------------------------------------------
def _make_qkv_kernel(C, eps=1e-5):
    def kernel(x_ref, w_ref, b_ref, g_ref, bln_ref, q_ref, kv_ref):
        xf = x_ref[...].astype(jnp.float32)
        mu = jnp.mean(xf, axis=-1, keepdims=True)
        d = xf - mu
        var = jnp.mean(d * d, axis=-1, keepdims=True)
        xn = d * jax.lax.rsqrt(var + eps) * g_ref[...] + bln_ref[...]
        y = jnp.dot(xn.astype(jnp.bfloat16), w_ref[...],
                    preferred_element_type=jnp.float32)
        y = y + b_ref[...].astype(jnp.float32)
        q_ref[...] = y[:, :C].astype(q_ref.dtype)
        kv_ref[...] = y[:, C:].astype(kv_ref.dtype)

    return kernel


@jax.jit
def qkv_projection(x2d, w, b, ln_g, ln_b):
    """LayerNorm(x) @ W_qkv + b -> (q (M,C), kv (M,2C)) in bf16."""
    M, C = x2d.shape
    N = w.shape[1]                               # 3C
    tm = 256 if M >= 256 else _round_up(M, 8)
    Mp = _round_up(M, tm)
    xp = x2d if Mp == M else jnp.pad(x2d, ((0, Mp - M), (0, 0)))

    q, kv = pl.pallas_call(
        _make_qkv_kernel(C),
        out_shape=(jax.ShapeDtypeStruct((Mp, C), jnp.bfloat16),
                   jax.ShapeDtypeStruct((Mp, 2 * C), jnp.bfloat16)),
        grid=(Mp // tm,),
        in_specs=[pl.BlockSpec((tm, C), lambda i: (i, 0)),
                  pl.BlockSpec((C, N), lambda i: (0, 0)),
                  pl.BlockSpec((1, N), lambda i: (0, 0)),
                  pl.BlockSpec((1, C), lambda i: (0, 0)),
                  pl.BlockSpec((1, C), lambda i: (0, 0))],
        out_specs=(pl.BlockSpec((tm, C), lambda i: (i, 0)),
                   pl.BlockSpec((tm, 2 * C), lambda i: (i, 0))),
        compiler_params=pltpu.CompilerParams(
            dimension_semantics=("parallel",)),
    )(xp, w, b.reshape(1, N), ln_g.reshape(1, C), ln_b.reshape(1, C))
    return q[:M], kv[:M]


# ---------------------------------------------------------------------------
# multi-head flash attention: all heads per block, lane-dense (tq, C) output
# ---------------------------------------------------------------------------
def _mh_flash_kernel(q_ref, kv_ref, o_ref, m_sc, l_sc, acc_sc,
                     *, scale, heads, dh):
    C = heads * dh
    j = pl.program_id(2)

    @pl.when(j == 0)
    def _():
        m_sc[...] = jnp.full_like(m_sc, -jnp.inf)
        l_sc[...] = jnp.zeros_like(l_sc)
        acc_sc[...] = jnp.zeros_like(acc_sc)

    q = q_ref[0]                                 # (tq, C)  bf16
    kv = kv_ref[0]                               # (tk, 2C) bf16
    for h in range(heads):
        sl = slice(h * dh, (h + 1) * dh)
        qh = (q[:, sl] * scale).astype(jnp.bfloat16)      # fold 1/sqrt(dh)
        kh = kv[:, sl].astype(jnp.bfloat16)
        vh = kv[:, C + h * dh:C + (h + 1) * dh].astype(jnp.bfloat16)

        s = jax.lax.dot_general(qh, kh, (((1,), (1,)), ((), ())),
                                preferred_element_type=jnp.float32)
        m_prev = m_sc[:, h:h + 1]
        m_new = jnp.maximum(m_prev, jnp.max(s, axis=-1, keepdims=True))
        alpha = jnp.exp(m_prev - m_new)
        p = jnp.exp(s - m_new)
        l_sc[:, h:h + 1] = alpha * l_sc[:, h:h + 1] + jnp.sum(
            p, axis=-1, keepdims=True)
        acc_sc[:, sl] = alpha * acc_sc[:, sl] + jnp.dot(
            p.astype(jnp.bfloat16), vh, preferred_element_type=jnp.float32)
        m_sc[:, h:h + 1] = m_new

    @pl.when(j == pl.num_programs(2) - 1)
    def _():
        tq = acc_sc.shape[0]
        inv = 1.0 / l_sc[...]                    # exact reciprocal
        inv_full = jnp.concatenate(
            [jnp.broadcast_to(inv[:, h:h + 1], (tq, dh)) for h in range(heads)],
            axis=-1)
        o_ref[0] = (acc_sc[...] * inv_full).astype(o_ref.dtype)


@functools.partial(jax.jit, static_argnames=("num_heads",))
def flash_attention(q, kv, num_heads=4):
    """q: (B,L,C), kv: (B,L,2C) bf16 -> multi-head attention, (B,L,C) bf16."""
    B, L, C = q.shape
    dh = C // num_heads
    scale = 1.0 / math.sqrt(dh)
    tq = min(128, L)
    tk = min(128, L)
    kern = functools.partial(_mh_flash_kernel, scale=scale,
                             heads=num_heads, dh=dh)
    return pl.pallas_call(
        kern,
        out_shape=jax.ShapeDtypeStruct((B, L, C), jnp.bfloat16),
        grid=(B, L // tq, L // tk),
        in_specs=[pl.BlockSpec((1, tq, C), lambda b, i, j: (b, i, 0)),
                  pl.BlockSpec((1, tk, 2 * C), lambda b, i, j: (b, j, 0))],
        out_specs=pl.BlockSpec((1, tq, C), lambda b, i, j: (b, i, 0)),
        scratch_shapes=[pltpu.VMEM((tq, num_heads), jnp.float32),
                        pltpu.VMEM((tq, num_heads), jnp.float32),
                        pltpu.VMEM((tq, C), jnp.float32)],
        compiler_params=pltpu.CompilerParams(
            dimension_semantics=("parallel", "parallel", "arbitrary")),
    )(q, kv)


# ---------------------------------------------------------------------------
# plain-JAX glue (NHWC): pooling, upsampling, concat, silu
# ---------------------------------------------------------------------------
def maxpool2x2(x):
    B, H, W, C = x.shape
    return x.reshape(B, H // 2, 2, W // 2, 2, C).max(axis=(2, 4))


@functools.lru_cache(maxsize=None)
def _bilinear_matrix(n_in, n_out):
    # align_corners=True interpolation matrix (static, built with numpy).
    src = np.arange(n_out, dtype=np.float64) * (n_in - 1) / (n_out - 1)
    i0 = np.clip(np.floor(src).astype(np.int64), 0, n_in - 1)
    i1 = np.minimum(i0 + 1, n_in - 1)
    w1 = (src - i0).astype(np.float32)
    m = np.zeros((n_out, n_in), np.float32)
    m[np.arange(n_out), i0] += 1.0 - w1
    m[np.arange(n_out), i1] += w1
    return jnp.asarray(m)


def upsample2x_bilinear(x):
    """nn.Upsample(scale_factor=2, mode='bilinear', align_corners=True)."""
    B, H, W, C = x.shape
    ry = _bilinear_matrix(H, 2 * H)
    rx = _bilinear_matrix(W, 2 * W)
    return jnp.einsum("yh,xw,bhwc->byxc", ry, rx, x).astype(jnp.bfloat16)


def silu(x):
    return x * jax.nn.sigmoid(x)


# ---------------------------------------------------------------------------
# module forwards
# ---------------------------------------------------------------------------
def double_conv(p, x, residual=False, emb=None):
    h = conv3x3_gn(x, p["w1"], p["g1"], p["b1"], apply_gelu=True)
    return conv3x3_gn(h, p["w2"], p["g2"], p["b2"],
                      res=x if residual else None, emb=emb)


def down_block(p, x, emb):
    # TODO(synk): maxpool could be fused into the first conv's prologue.
    x = maxpool2x2(x)
    x = double_conv(p["dc1"], x, residual=True)
    return double_conv(p["dc2"], x, emb=emb)                    # emb add fused


def up_block(p, x, x_skip, emb):
    # TODO(synk): concat could be avoided by splitting w1 along Cin.
    x = upsample2x_bilinear(x)
    x = jnp.concatenate([x_skip, x], axis=-1)
    x = double_conv(p["dc1"], x, residual=True)
    return double_conv(p["dc2"], x, emb=emb)


def transformer_sa(p, x, num_heads=4):
    B, H, W, C = x.shape
    L = H * W
    x2d = x.reshape(B * L, C)

    # LayerNorm1 fused into the qkv projection; lane-dense (q, kv) outputs.
    q, kv = qkv_projection(x2d, p["in_w"], p["in_b"], p["ln1_g"], p["ln1_b"])
    ctx = flash_attention(q.reshape(B, L, C), kv.reshape(B, L, 2 * C),
                          num_heads=num_heads)

    # out_proj with residual (attention_value + x) fused into the epilogue.
    x2 = pallas_linear(ctx.reshape(B * L, C), p["out_w"], p["out_b"], res=x2d)

    # MLP: LayerNorm2 fused into fc1; reference MLP ends with GELU on fc2,
    # then the residual is added.
    h = pallas_linear(x2, p["fc1_w"], p["fc1_b"], act="gelu",
                      ln_g=p["ln2_g"], ln_b=p["ln2_b"])
    out = pallas_linear(h, p["fc2_w"], p["fc2_b"], act="gelu", res=x2)
    return out.reshape(B, H, W, C)


def unet_forward(params, x, t):
    """x: (B, 3, H, W) NCHW (as the PyTorch module), t: (B,1,1,1) int."""
    B = x.shape[0]
    x = jnp.transpose(x, (0, 2, 3, 1)).astype(jnp.bfloat16)     # NCHW -> NHWC
    # TODO(synk): Dropout (PositionalEncoding p=0.1, MLP p=0.0) is eval-mode identity.
    t_emb = params["pos_encoding"][t.reshape(B)]                 # (B, time_dim)

    # All six time-embedding projections in a single small matmul.
    blocks = ("down1", "down2", "down3", "up1", "up2", "up3")
    widths = [int(params[b]["emb_b"].shape[0]) for b in blocks]
    w_all = jnp.concatenate([params[b]["emb_w"] for b in blocks], axis=1)
    b_all = jnp.concatenate([params[b]["emb_b"] for b in blocks])
    emb_all = pallas_linear(silu(t_emb), w_all, b_all)           # (B, sum(Ci))
    offs = [0]
    for w_ in widths:
        offs.append(offs[-1] + w_)
    embs = {blk: emb_all[:, offs[i]:offs[i + 1]]
            for i, blk in enumerate(blocks)}

    x1 = double_conv(params["input_conv"], x)
    x2 = down_block(params["down1"], x1, embs["down1"])
    x2 = transformer_sa(params["sa1"], x2)
    x3 = down_block(params["down2"], x2, embs["down2"])
    x3 = transformer_sa(params["sa2"], x3)
    x4 = down_block(params["down3"], x3, embs["down3"])
    x4 = transformer_sa(params["sa3"], x4)

    x4 = double_conv(params["bottleneck1"], x4)
    x4 = double_conv(params["bottleneck2"], x4)
    x4 = double_conv(params["bottleneck3"], x4)

    x = up_block(params["up1"], x4, x3, embs["up1"])
    x = transformer_sa(params["sa4"], x)
    x = up_block(params["up2"], x, x2, embs["up2"])
    x = transformer_sa(params["sa5"], x)
    x = up_block(params["up3"], x, x1, embs["up3"])
    x = transformer_sa(params["sa6"], x)

    Bo, Ho, Wo, Co = x.shape
    y = pallas_linear(x.reshape(Bo * Ho * Wo, Co),
                      params["out_w"], params["out_b"],
                      out_dtype=jnp.float32)                     # 1x1 conv
    y = y.reshape(Bo, Ho, Wo, -1)
    return jnp.transpose(y, (0, 3, 1, 2))                        # NHWC -> NCHW


# ---------------------------------------------------------------------------
# deterministic parameter construction (weights pre-transposed, bf16 for MXU)
# ---------------------------------------------------------------------------
def make_pos_encoding(max_len, dim):
    position = jnp.arange(max_len, dtype=jnp.float32)[:, None]
    div_term = jnp.exp(-math.log(10000.0) *
                       jnp.arange(0, dim, 2, dtype=jnp.float32) / dim)
    pe = jnp.zeros((max_len, dim), dtype=jnp.float32)
    pe = pe.at[:, 0::2].set(jnp.sin(position * div_term))
    pe = pe.at[:, 1::2].set(jnp.cos(position * div_term))
    return pe


class _Keys:
    def __init__(self, key):
        self._key = key

    def __call__(self):
        self._key, sub = jax.random.split(self._key)
        return sub


def _conv_w(kg, cin, cout, scale=0.05):
    w = scale * jax.random.normal(kg(), (cout, cin, 3, 3), dtype=jnp.float32)
    # store as (9, Cin, Cout): tap t = kh*3 + kw
    return w.transpose(2, 3, 1, 0).reshape(9, cin, cout).astype(jnp.bfloat16)


def _lin_w(kg, fin, fout, scale=0.05):
    w = scale * jax.random.normal(kg(), (fout, fin), dtype=jnp.float32)
    return w.T.astype(jnp.bfloat16)          # stored pre-transposed (in, out)


def _bias(kg, n, scale=0.05):
    return scale * jax.random.normal(kg(), (n,), dtype=jnp.float32)


def init_double_conv(kg, cin, cout, cmid=None):
    cmid = cmid or cout
    return {
        "w1": _conv_w(kg, cin, cmid),
        "g1": jnp.ones((cmid,), jnp.float32),
        "b1": jnp.zeros((cmid,), jnp.float32),
        "w2": _conv_w(kg, cmid, cout),
        "g2": jnp.ones((cout,), jnp.float32),
        "b2": jnp.zeros((cout,), jnp.float32),
    }


def init_down(kg, cin, cout, emb_dim=256):
    return {
        "dc1": init_double_conv(kg, cin, cin),
        "dc2": init_double_conv(kg, cin, cout),
        "emb_w": _lin_w(kg, emb_dim, cout),
        "emb_b": _bias(kg, cout),
    }


def init_up(kg, cin, cout, emb_dim=256):
    return {
        "dc1": init_double_conv(kg, cin, cin),
        "dc2": init_double_conv(kg, cin, cout, cmid=cin // 2),
        "emb_w": _lin_w(kg, emb_dim, cout),
        "emb_b": _bias(kg, cout),
    }


def init_sa(kg, c, hidden=1024):
    return {
        "ln1_g": jnp.ones((c,), jnp.float32),
        "ln1_b": jnp.zeros((c,), jnp.float32),
        "in_w": _lin_w(kg, c, 3 * c),
        "in_b": _bias(kg, 3 * c),
        "out_w": _lin_w(kg, c, c),
        "out_b": _bias(kg, c),
        "ln2_g": jnp.ones((c,), jnp.float32),
        "ln2_b": jnp.zeros((c,), jnp.float32),
        "fc1_w": _lin_w(kg, c, hidden),
        "fc1_b": _bias(kg, hidden),
        "fc2_w": _lin_w(kg, hidden, c),
        "fc2_b": _bias(kg, c),
    }


def init_unet(key, noise_steps=1000, in_channels=3, out_channels=3,
              time_dim=256):
    kg = _Keys(key)
    return {
        "pos_encoding": make_pos_encoding(noise_steps, time_dim),
        "input_conv": init_double_conv(kg, in_channels, 64),
        "down1": init_down(kg, 64, 128),
        "sa1": init_sa(kg, 128),
        "down2": init_down(kg, 128, 256),
        "sa2": init_sa(kg, 256),
        "down3": init_down(kg, 256, 256),
        "sa3": init_sa(kg, 256),
        "bottleneck1": init_double_conv(kg, 256, 512),
        "bottleneck2": init_double_conv(kg, 512, 512),
        "bottleneck3": init_double_conv(kg, 512, 256),
        "up1": init_up(kg, 512, 128),
        "sa4": init_sa(kg, 128),
        "up2": init_up(kg, 256, 64),
        "sa5": init_sa(kg, 64),
        "up3": init_up(kg, 128, 64),
        "sa6": init_sa(kg, 64),
        "out_w": _lin_w(kg, 64, out_channels),
        "out_b": _bias(kg, out_channels),
    }


if __name__ == "__main__":
    key = jax.random.PRNGKey(0)
    k_param, k_x = jax.random.split(key)
    params = init_unet(k_param, noise_steps=1000)

    # The PyTorch reference hard-codes SA sizes for 64x64 inputs; here the SA
    # sizes are derived from the feature maps, so the identical forward is
    # exercised at a small, fast 16x16 resolution.
    B, H, W = 2, 16, 16
    x = jax.random.normal(k_x, (B, 3, H, W), dtype=jnp.float32)
    t = jnp.full((B, 1, 1, 1), 7, dtype=jnp.int32)   # mirrors LongTensor (B,1,1,1)

    out = unet_forward(params, x, t)
    out = jax.block_until_ready(out)
    assert out.shape == (B, 3, H, W), out.shape
    assert bool(jnp.all(jnp.isfinite(out)))
    print("KERNEL_OK")
</pallas_src>

<mosaic_0001>
module attributes {stable_mosaic.version = 11 : i64} {
  func.func @kernel(%arg0: i32, %arg1: memref<8x256xf32, #tpu.memory_space<vmem>>, %arg2: memref<256x896xbf16, #tpu.memory_space<vmem>>, %arg3: memref<1x896xf32, #tpu.memory_space<vmem>>, %arg4: memref<8x896xbf16, #tpu.memory_space<vmem>>) attributes {dimension_semantics = [#tpu.dimension_semantics<parallel>], iteration_bounds = array<i64: 1>, scalar_prefetch = 0 : i64, scratch_operands = 0 : i64, tpu.core_type = #tpu.core_type<tc>, window_params = [{transform_indices = @transform_0, window_bounds = array<i64: 8, 256>}, {pipeline_mode = #tpu.pipeline_mode<synchronous>, transform_indices = @transform_1, window_bounds = array<i64: 256, 896>}, {pipeline_mode = #tpu.pipeline_mode<synchronous>, transform_indices = @transform_2, window_bounds = array<i64: 1, 896>}, {transform_indices = @transform_3, window_bounds = array<i64: 8, 896>}]} {
    %c0 = arith.constant 0 : index
    %c0_0 = arith.constant 0 : index
    %0 = vector.load %arg1[%c0, %c0_0] : memref<8x256xf32, #tpu.memory_space<vmem>>, vector<8x256xf32>
    %1 = arith.truncf %0 : vector<8x256xf32> to vector<8x256xbf16>
    %c0_1 = arith.constant 0 : index
    %c0_2 = arith.constant 0 : index
    %2 = vector.load %arg2[%c0_1, %c0_2] : memref<256x896xbf16, #tpu.memory_space<vmem>>, vector<256x896xbf16>
    %cst = arith.constant dense<0.000000e+00> : vector<8x896xf32>
    %3 = tpu.matmul %1, %2, %cst {dimension_numbers = #tpu.dot_dimension_numbers<[1], [0], [0], [1], [0, 0, 1, 1], [], []>} : vector<8x256xbf16>, vector<256x896xbf16>, vector<8x896xf32> -> vector<8x896xf32>
    %c0_3 = arith.constant 0 : index
    %c0_4 = arith.constant 0 : index
    %4 = vector.load %arg3[%c0_3, %c0_4] : memref<1x896xf32, #tpu.memory_space<vmem>>, vector<1x896xf32>
    %5 = vector.broadcast %4 : vector<1x896xf32> to vector<8x896xf32>
    %6 = arith.addf %3, %5 : vector<8x896xf32>
    %7 = arith.truncf %6 : vector<8x896xf32> to vector<8x896xbf16>
    %c0_5 = arith.constant 0 : index
    %c0_6 = arith.constant 0 : index
    %8 = vector.load %arg4[%c0_5, %c0_6] : memref<8x896xbf16, #tpu.memory_space<vmem>>, vector<8x896xbf16>
    tpu.vector_store %arg4[%c0_5, %c0_6], %7 {strides = array<i32>} : memref<8x896xbf16, #tpu.memory_space<vmem>>, vector<8x896xbf16>,
    return
  }
  func.func @transform_0(%arg0: i32) -> (i32, i32) {
    %c0_i32 = arith.constant 0 : i32
    %c0_i32_0 = arith.constant 0 : i32
    return %arg0, %c0_i32 : i32, i32
  }
  func.func @transform_1(%arg0: i32) -> (i32, i32) {
    %c0_i32 = arith.constant 0 : i32
    %c0_i32_0 = arith.constant 0 : i32
    %c0_i32_1 = arith.constant 0 : i32
    return %c0_i32, %c0_i32_0 : i32, i32
  }
  func.func @transform_2(%arg0: i32) -> (i32, i32) {
    %c0_i32 = arith.constant 0 : i32
    %c0_i32_0 = arith.constant 0 : i32
    %c0_i32_1 = arith.constant 0 : i32
    return %c0_i32, %c0_i32_0 : i32, i32
  }
  func.func @transform_3(%arg0: i32) -> (i32, i32) {
    %c0_i32 = arith.constant 0 : i32
    %c0_i32_0 = arith.constant 0 : i32
    return %arg0, %c0_i32 : i32, i32
  }
}

</mosaic_0001>

<bundles_post_ra>
// kernel: pallas_linear.1
= control target key start
LH: loop header
LB: loop body
LE: loop exit
PB: predicated region body
PF: predicated region fallthrough
CT: control target
= control target key end

     0   :  { %8 = vsyncpa [#allocation3], 0  ;;  %s1304_s12 = smov [#allocation2]   ;;  %s1372_s0 = inlined_call_operand.vmem [shape: f32[8,256], index: 0, kind: input, shape index: {}]   ;;  %s1373_s1 = inlined_call_operand.hbm [shape: bf16[256,896], index: 1, kind: input, shape index: {}]   ;;  %s1374_s2 = inlined_call_operand.vmem [shape: f32[1,896], index: 2, kind: input, shape index: {}]   ;;  %s1375_s3 = inlined_call_operand.vmem [shape: bf16[8,896], index: 3, kind: output, shape index: {}]  }
   0x1   :  { %s16_s13 = sshll.u32 %s1304_s12, 4  ;;  %s1280_s16 = scalar_lea.hbm %s1373_s1, 14336  ;;  %s17_s13 = int_to_ptr.vmem [resolvable:$true] %s16_s13 }
   0x2   :  { %p1281_p0 = scmp.ne.s32.totalorder %s1373_s1, %s1280_s16  ;;  %p1284_p1 = scmp.lt.u32.totalorder %s1280_s16, %s1373_s1 }
   0x4   :  { %p1286_p2 = pnand %p1284_p1, %p1281_p0 }
   0x6   :  { %1289 = shalt.err (!%p1286_p2)
}
   0x7   :  { %s1290_s21 = scalar_lea.vmem %s17_s13, 14336  ;;  %p1295_p4 = scmp.lt.s32.totalorder %s17_s13, %s17_s13 }
   0x8   :  { %p1291_p3 = scmp.ne.s32.totalorder %s17_s13, %s1290_s21  ;;  %p1296_p5 = scmp.lt.s32.totalorder %s1290_s21, %s1290_s21 }
   0xa   :  { %p1297_p6 = por %p1296_p5, %p1295_p4 }
   0xc   :  { %p1298_p7 = pnand %p1297_p6, %p1291_p3 }
   0xe   :  { %1301 = shalt.err (!%p1298_p7)
}
   0xf   :  { %s1305_s22 = smov 448   ;;  %s1306_s23 = smov 28  }
  0x10   :  { %22 = dma.hbm_to_vmem [thread:$0]  %s1373_s1, 14336, %s17_s13, [#allocation3], %s1305_s22, %s1305_s22, %s1306_s23  }
  0x11   :  { %1302 = dma.done.wait [#allocation3], 14336  }
  0x12   :  { %1303 = vsyncadd [#allocation3], 4294952960  ;;  %v1120_v0 = vld [vmem:[#allocation2 + $0x4] ss:$28 sps:$4 sm:$0xff]   ;;  %v1123_v2 = vld [vmem:[#allocation2 + $0x3c] ss:$28 sps:$4 sm:$0xff]  }
  0x13   :  { %v1122_v1 = vld [vmem:[#allocation2] ss:$28 sps:$4 sm:$0xff]   ;;  %774 = vmatprep.subr.bf16.mxu0 %v1120_v0  ;;  %v1125_v3 = vld [vmem:[#allocation2 + $0x38] ss:$28 sps:$4 sm:$0xff]   ;;  %v1128_v5 = vld [vmem:[#allocation2 + $0x70] ss:$28 sps:$4 sm:$0xff]  }
  0x14   :  { %775 = vmatpush1.bf16.msra.mxu0 %v1122_v1  ;;  %v1126_v4 = vld [vmem:[#allocation2 + $0x74] ss:$28 sps:$4 sm:$0xff]   ;;  %v1129_v6 = vld [vmem:[#allocation2 + $0xac] ss:$28 sps:$4 sm:$0xff]   ;;  %v1132_v9 = vld [vmem:[#allocation2 + $0xe4] ss:$28 sps:$4 sm:$0xff]  }
  0x15   :  { %776 = vmatprep.subr.bf16.mxu0 %v1123_v2  ;;  %v1141_v7 = vld [vmem:[#allocation2 + $0xc] ss:$28 sps:$4 sm:$0xff]   ;;  %v1147_v11 = vld [vmem:[#allocation2 + $0x44] ss:$28 sps:$4 sm:$0xff]   ;;  %v1153_v14 = vld [vmem:[#allocation2 + $0x7c] ss:$28 sps:$4 sm:$0xff]  }
  0x16   :  { %v1131_v8 = vld [vmem:[#allocation2 + $0xa8] ss:$28 sps:$4 sm:$0xff]   ;;  %815 = vmatprep.subr.bf16.mxu1 %v1141_v7  ;;  %v1134_v12 = vld [vmem:[#allocation2 + $0xe0] ss:$28 sps:$4 sm:$0xff]   ;;  %v1157_v16 = vld [vmem:[#allocation2 + $0x78] ss:$28 sps:$4 sm:$0xff]  }
  0x17   :  { %v1145_v10 = vld [vmem:[#allocation2 + $0x8] ss:$28 sps:$4 sm:$0xff]   ;;  %v1151_v13 = vld [vmem:[#allocation2 + $0x40] ss:$28 sps:$4 sm:$0xff]   ;;  %v1159_v17 = vld [vmem:[#allocation2 + $0xb4] ss:$28 sps:$4 sm:$0xff]  }
  0x18   :  { %777 = vmatpush1.bf16.msra.mxu0 %v1125_v3  ;;  %816 = vmatpush1.bf16.msra.mxu1 %v1145_v10  ;;  %v1135_v15 = vld [vmem:[#allocation2 + $0x11c] ss:$28 sps:$4 sm:$0xff]   ;;  %v1138_v19 = vld [vmem:[#allocation2 + $0x154] ss:$28 sps:$4 sm:$0xff]   ;;  %v1165_v21 = vld [vmem:[#allocation2 + $0xec] ss:$28 sps:$4 sm:$0xff]  }
  0x19   :  { %778 = vmatprep.subr.bf16.mxu0 %v1126_v4  ;;  %817 = vmatprep.subr.bf16.mxu1 %v1147_v11  ;;  %v1137_v18 = vld [vmem:[#allocation2 + $0x118] ss:$28 sps:$4 sm:$0xff]   ;;  %v1163_v20 = vld [vmem:[#allocation2 + $0xb0] ss:$28 sps:$4 sm:$0xff]   ;;  %v1169_v24 = vld [vmem:[#allocation2 + $0xe8] ss:$28 sps:$4 sm:$0xff]  }
  0x1a   :  { %v1140_v22 = vld [vmem:[#allocation2 + $0x150] ss:$28 sps:$4 sm:$0xff]   ;;  %v1171_v25 = vld [vmem:[#allocation2 + $0x124] ss:$28 sps:$4 sm:$0xff]   ;;  %v1177_v29 = vld [vmem:[#allocation2 + $0x15c] ss:$28 sps:$4 sm:$0xff]  }
  0x1b   :  { %v1143_v23 = vld [vmem:[#allocation2 + $0x18c] ss:$28 sps:$4 sm:$0xff]   ;;  %v1149_v27 = vld [vmem:[#allocation2 + $0x1c4] ss:$28 sps:$4 sm:$0xff]   ;;  %v1155_v31 = vld [vmem:[#allocation2 + $0x1fc] ss:$28 sps:$4 sm:$0xff]  }
  0x1c   :  { %779 = vmatpush1.bf16.msra.mxu0 %v1128_v5  ;;  %818 = vmatpush1.bf16.msra.mxu1 %v1151_v13  ;;  %v1146_v26 = vld [vmem:[#allocation2 + $0x188] ss:$28 sps:$4 sm:$0xff]   ;;  %v1175_v28 = vld [vmem:[#allocation2 + $0x120] ss:$28 sps:$4 sm:$0xff]   ;;  %v1181_v32 = vld [vmem:[#allocation2 + $0x158] ss:$28 sps:$4 sm:$0xff]  }
  0x1d   :  { %780 = vmatprep.subr.bf16.mxu0 %v1129_v6  ;;  %819 = vmatprep.subr.bf16.mxu1 %v1153_v14  ;;  %v1152_v30 = vld [vmem:[#allocation2 + $0x1c0] ss:$28 sps:$4 sm:$0xff]   ;;  %v30_v33 = vld [vmem:[%s1372_s0 + $0x8] sm:$0xff]  ;;  %v1183_v34 = vld [vmem:[#allocation2 + $0x194] ss:$28 sps:$4 sm:$0xff]  }
  0x1e   :  { %v1342_v35 = vpack.c.bf16 %v30_v33, %v30_v33  ;;  %v1158_v36 = vld [vmem:[#allocation2 + $0x1f8] ss:$28 sps:$4 sm:$0xff]   ;;  %v1187_v38 = vld [vmem:[#allocation2 + $0x190] ss:$28 sps:$4 sm:$0xff]   ;;  %v1193_v42 = vld [vmem:[#allocation2 + $0x1c8] ss:$28 sps:$4 sm:$0xff]  }
  0x1f   :  { %v1161_v37 = vld [vmem:[#allocation2 + $0x234] ss:$28 sps:$4 sm:$0xff]   ;;  %v1189_v39 = vld [vmem:[#allocation2 + $0x1cc] ss:$28 sps:$4 sm:$0xff]   ;;  %v1195_v43 = vld [vmem:[#allocation2 + $0x204] ss:$28 sps:$4 sm:$0xff]  }
  0x20   :  { %781 = vmatpush1.bf16.msra.mxu0 %v1131_v8  ;;  %820 = vmatpush1.bf16.msra.mxu1 %v1157_v16  ;;  %v1164_v40 = vld [vmem:[#allocation2 + $0x230] ss:$28 sps:$4 sm:$0xff]   ;;  %v1170_v44 = vld [vmem:[#allocation2 + $0x268] ss:$28 sps:$4 sm:$0xff]   ;;  %v1197_v46 = vld [vmem:[#allocation2 + $0x200] ss:$28 sps:$4 sm:$0xff]  }
  0x21   :  { %782 = vmatprep.subr.bf16.mxu0 %v1132_v9  ;;  %821 = vmatprep.subr.bf16.mxu1 %v1159_v17  ;;  %v1167_v41 = vld [vmem:[#allocation2 + $0x26c] ss:$28 sps:$4 sm:$0xff]   ;;  %v1173_v45 = vld [vmem:[#allocation2 + $0x2a4] ss:$28 sps:$4 sm:$0xff]   ;;  %v1201_v47 = vld [vmem:[#allocation2 + $0x23c] ss:$28 sps:$4 sm:$0xff]  }
  0x22   :  { %806 = vmatprep.mubr.bf16.mxu0 %v1342_v35  ;;  %847 = vmatprep.mubr.bf16.mxu1 %v1342_v35  ;;  %v1176_v48 = vld [vmem:[#allocation2 + $0x2a0] ss:$28 sps:$4 sm:$0xff]   ;;  %v1203_v50 = vld [vmem:[#allocation2 + $0x238] ss:$28 sps:$4 sm:$0xff]   ;;  %v1209_v54 = vld [vmem:[#allocation2 + $0x270] ss:$28 sps:$4 sm:$0xff]  }
  0x23   :  { %v1179_v49 = vld [vmem:[#allocation2 + $0x2dc] ss:$28 sps:$4 sm:$0xff]   ;;  %v1207_v51 = vld [vmem:[#allocation2 + $0x274] ss:$28 sps:$4 sm:$0xff]   ;;  %v1213_v55 = vld [vmem:[#allocation2 + $0x2ac] ss:$28 sps:$4 sm:$0xff]  }
  0x24   :  { %783 = vmatpush1.bf16.msra.mxu0 %v1134_v12  ;;  %822 = vmatpush1.bf16.msra.mxu1 %v1163_v20  ;;  %v1182_v52 = vld [vmem:[#allocation2 + $0x2d8] ss:$28 sps:$4 sm:$0xff]   ;;  %v1188_v56 = vld [vmem:[#allocation2 + $0x310] ss:$28 sps:$4 sm:$0xff]   ;;  %v1194_v58 = vld [vmem:[#allocation2 + $0x348] ss:$28 sps:$4 sm:$0xff]  }
  0x25   :  { %784 = vmatprep.subr.bf16.mxu0 %v1135_v15  ;;  %823 = vmatprep.subr.bf16.mxu1 %v1165_v21  ;;  %v1185_v53 = vld [vmem:[#allocation2 + $0x314] ss:$28 sps:$4 sm:$0xff]   ;;  %v1191_v57 = vld [vmem:[#allocation2 + $0x34c] ss:$28 sps:$4 sm:$0xff]   ;;  %v1219_v60 = vld [vmem:[#allocation2 + $0x2e4] ss:$28 sps:$4 sm:$0xff]  }
  0x26   :  { %v1215_v59 = vld [vmem:[#allocation2 + $0x2a8] ss:$28 sps:$4 sm:$0xff]   ;;  %v1200_v62 = vld [vmem:[#allocation2 + $0x14] ss:$28 sps:$4 sm:$0xff]   ;;  %v1221_v63 = vld [vmem:[#allocation2 + $0x2e0] ss:$28 sps:$4 sm:$0xff]  }
  0x27   :  { %v29_v61 = vld [vmem:[%s1372_s0] sm:$0xff]  ;;  %v1225_v1 = vld [vmem:[#allocation2 + $0x31c] ss:$28 sps:$4 sm:$0xff]   ;;  %v1198_v2 = vld [vmem:[#allocation2 + $0x10] ss:$28 sps:$4 sm:$0xff]  }
  0x28   :  { %785 = vmatpush1.bf16.msra.mxu0 %v1137_v18  ;;  %824 = vmatpush1.bf16.msra.mxu1 %v1169_v24  ;;  %v1349_v0 = vpack.c.bf16 %v29_v61, %v29_v61  ;;  %v1206_v3 = vld [vmem:[#allocation2 + $0x4c] ss:$28 sps:$4 sm:$0xff]   ;;  %v1227_v4 = vld [vmem:[#allocation2 + $0x318] ss:$28 sps:$4 sm:$0xff]   ;;  %v1212_v7 = vld [vmem:[#allocation2 + $0x84] ss:$28 sps:$4 sm:$0xff]  }
  0x29   :  { %786 = vmatprep.subr.bf16.mxu0 %v1138_v19  ;;  %825 = vmatprep.subr.bf16.mxu1 %v1171_v25  ;;  %v1231_v5 = vld [vmem:[#allocation2 + $0x354] ss:$28 sps:$4 sm:$0xff]   ;;  %v1204_v6 = vld [vmem:[#allocation2 + $0x48] ss:$28 sps:$4 sm:$0xff]   ;;  %v1210_v10 = vld [vmem:[#allocation2 + $0x80] ss:$28 sps:$4 sm:$0xff]  }
  0x2a   :  { %v1233_v8 = vld [vmem:[#allocation2 + $0x350] ss:$28 sps:$4 sm:$0xff]   ;;  %v1237_v9 = vld [vmem:[#allocation2 + $0x1d8] ss:$28 sps:$4 sm:$0xff]   ;;  %v1247_v17 = vld [vmem:[#allocation2 + $0x248] ss:$28 sps:$4 sm:$0xff]  }
  0x2b   :  { %v1218_v11 = vld [vmem:[#allocation2 + $0xbc] ss:$28 sps:$4 sm:$0xff]   ;;  %v1242_v13 = vld [vmem:[#allocation2 + $0x210] ss:$28 sps:$4 sm:$0xff]   ;;  %v1251_v20 = vld [vmem:[#allocation2 + $0x88] ss:$28 sps:$4 sm:$0xff]  }
  0x2c   :  { %787 = vmatpush1.bf16.msra.mxu0 %v1140_v22  ;;  %826 = vmatpush1.bf16.msra.mxu1 %v1175_v28  ;;  %v1241_v12 = vld [vmem:[#allocation2 + $0x18] ss:$28 sps:$4 sm:$0xff]   ;;  %v1246_v16 = vld [vmem:[#allocation2 + $0x50] ss:$28 sps:$4 sm:$0xff]   ;;  %v1252_v21 = vld [vmem:[#allocation2 + $0x280] ss:$28 sps:$4 sm:$0xff]  }
  0x2d   :  { %788 = vmatprep.subr.bf16.mxu0 %v1143_v23  ;;  %827 = vmatprep.subr.bf16.mxu1 %v1177_v29  ;;  %v1216_v14 = vld [vmem:[#allocation2 + $0xb8] ss:$28 sps:$4 sm:$0xff]   ;;  %v1222_v18 = vld [vmem:[#allocation2 + $0xf0] ss:$28 sps:$4 sm:$0xff]   ;;  %v1228_v22 = vld [vmem:[#allocation2 + $0x128] ss:$28 sps:$4 sm:$0xff]  }
  0x2e   :  { %v1224_v15 = vld [vmem:[#allocation2 + $0xf4] ss:$28 sps:$4 sm:$0xff]   ;;  %v1230_v19 = vld [vmem:[#allocation2 + $0x12c] ss:$28 sps:$4 sm:$0xff]   ;;  %v1236_v23 = vld [vmem:[#allocation2 + $0x164] ss:$28 sps:$4 sm:$0xff]  }
  0x2f   :  { %v1256_v24 = vld [vmem:[#allocation2 + $0xc0] ss:$28 sps:$4 sm:$0xff]   ;;  %v1257_v25 = vld [vmem:[#allocation2 + $0x2b8] ss:$28 sps:$4 sm:$0xff]   ;;  %v1262_v29 = vld [vmem:[#allocation2 + $0x2f0] ss:$28 sps:$4 sm:$0xff]  }
  0x30   :  { %789 = vmatpush1.bf16.msra.mxu0 %v1146_v26  ;;  %828 = vmatpush1.bf16.msra.mxu1 %v1181_v32  ;;  %v1234_v26 = vld [vmem:[#allocation2 + $0x160] ss:$28 sps:$4 sm:$0xff]   ;;  %v1261_v28 = vld [vmem:[#allocation2 + $0xf8] ss:$28 sps:$4 sm:$0xff]   ;;  %v1266_v32 = vld [vmem:[#allocation2 + $0x130] ss:$28 sps:$4 sm:$0xff]  }
  0x31   :  { %790 = vmatprep.subr.bf16.mxu0 %v1149_v27  ;;  %829 = vmatprep.subr.bf16.mxu1 %v1183_v34  ;;  %v1240_v27 = vld [vmem:[#allocation2 + $0x19c] ss:$28 sps:$4 sm:$0xff]   ;;  %v1267_v33 = vld [vmem:[#allocation2 + $0x328] ss:$28 sps:$4 sm:$0xff]   ;;  %v1243_v34 = vld [vmem:[#allocation2 + $0x1d0] ss:$28 sps:$4 sm:$0xff]  }
  0x34   :  { %791 = vmatpush1.bf16.msra.mxu0 %v1152_v30  ;;  %830 = vmatpush1.bf16.msra.mxu1 %v1187_v38  ;;  %v1238_v30 = vld [vmem:[#allocation2 + $0x198] ss:$28 sps:$4 sm:$0xff]   ;;  %v1248_v38 = vld [vmem:[#allocation2 + $0x208] ss:$28 sps:$4 sm:$0xff]  }
  0x35   :  { %792 = vmatprep.subr.bf16.mxu0 %v1155_v31  ;;  %831 = vmatprep.subr.bf16.mxu1 %v1189_v39  ;;  %v1245_v31 = vld [vmem:[#allocation2 + $0x1d4] ss:$28 sps:$4 sm:$0xff]   ;;  %v1255_v39 = vld [vmem:[#allocation2 + $0x244] ss:$28 sps:$4 sm:$0xff]  }
  0x38   :  { %793 = vmatpush1.bf16.msra.mxu0 %v1158_v36  ;;  %832 = vmatpush1.bf16.msra.mxu1 %v1193_v42  ;;  %v1271_v36 = vld [vmem:[#allocation2 + $0x168] ss:$28 sps:$4 sm:$0xff]   ;;  %v1260_v42 = vld [vmem:[#allocation2 + $0x27c] ss:$28 sps:$4 sm:$0xff]  }
  0x39   :  { %794 = vmatprep.subr.bf16.mxu0 %v1161_v37  ;;  %833 = vmatprep.subr.bf16.mxu1 %v1195_v43  ;;  %v1272_v37 = vld [vmem:[#allocation2 + $0x360] ss:$28 sps:$4 sm:$0xff]   ;;  %v1258_v43 = vld [vmem:[#allocation2 + $0x278] ss:$28 sps:$4 sm:$0xff]  }
  0x3c   :  { %795 = vmatpush1.bf16.msra.mxu0 %v1164_v40  ;;  %834 = vmatpush1.bf16.msra.mxu1 %v1197_v46  ;;  %v1276_v40 = vld [vmem:[#allocation2 + $0x1a0] ss:$28 sps:$4 sm:$0xff]   ;;  %v1270_v46 = vld [vmem:[#allocation2 + $0x2ec] ss:$28 sps:$4 sm:$0xff]  }
  0x3d   :  { %796 = vmatprep.subr.bf16.mxu0 %v1167_v41  ;;  %835 = vmatprep.subr.bf16.mxu1 %v1201_v47  ;;  %v1253_v41 = vld [vmem:[#allocation2 + $0x240] ss:$28 sps:$4 sm:$0xff]   ;;  %v1268_v47 = vld [vmem:[#allocation2 + $0x2e8] ss:$28 sps:$4 sm:$0xff]  }
  0x40   :  { %797 = vmatpush1.bf16.msra.mxu0 %v1170_v44  ;;  %836 = vmatpush1.bf16.msra.mxu1 %v1203_v50  ;;  %v1265_v44 = vld [vmem:[#allocation2 + $0x2b4] ss:$28 sps:$4 sm:$0xff]   ;;  %v1279_v50 = vld [vmem:[#allocation2 + $0x35c] ss:$28 sps:$4 sm:$0xff]  }
  0x41   :  { %798 = vmatprep.subr.bf16.mxu0 %v1173_v45  ;;  %837 = vmatprep.subr.bf16.mxu1 %v1207_v51  ;;  %v1263_v45 = vld [vmem:[#allocation2 + $0x2b0] ss:$28 sps:$4 sm:$0xff]   ;;  %v1277_v51 = vld [vmem:[#allocation2 + $0x358] ss:$28 sps:$4 sm:$0xff]  }
  0x44   :  { %799 = vmatpush1.bf16.msra.mxu0 %v1176_v48  ;;  %838 = vmatpush1.bf16.msra.mxu1 %v1209_v54  ;;  %v1275_v48 = vld [vmem:[#allocation2 + $0x324] ss:$28 sps:$4 sm:$0xff]  }
  0x45   :  { %800 = vmatprep.subr.bf16.mxu0 %v1179_v49  ;;  %839 = vmatprep.subr.bf16.mxu1 %v1213_v55  ;;  %v1273_v49 = vld [vmem:[#allocation2 + $0x320] ss:$28 sps:$4 sm:$0xff]  }
  0x46   :  { %v161_v55 = vld [vmem:[%s1374_s2] sm:$0xff] }
  0x48   :  { %801 = vmatpush1.bf16.msra.mxu0 %v1182_v52  ;;  %840 = vmatpush1.bf16.msra.mxu1 %v1215_v59  ;;  %v163_v52 = vlaneseq }
  0x49   :  { %802 = vmatprep.subr.bf16.mxu0 %v1185_v53  ;;  %841 = vmatprep.subr.bf16.mxu1 %v1219_v60 }
  0x4a   :  { %v164_v53 = vshrl.u32 %v163_v52, 7 }
  0x4c   :  { %803 = vmatpush1.bf16.msra.mxu0 %v1188_v56  ;;  %842 = vmatpush1.bf16.msra.mxu1 %v1221_v63  ;;  %v181_v54 = vsub.s32 4, %v164_v53  ;;  %v165_v59 = vsub.s32 0, %v164_v53  ;;  %v169_v60 = vsub.s32 1, %v164_v53 }
  0x4d   :  { %804 = vmatprep.subr.bf16.mxu0 %v1191_v57  ;;  %843 = vmatprep.subr.bf16.mxu1 %v1225_v1  ;;  %v185_v57 = vsub.s32 5, %v164_v53 }
  0x4e   :  { %v182_v56 = vrot.slane %v161_v55, %v181_v54  ;;  %v166_v61 = vrot.slane %v161_v55, %v165_v59 }
  0x50   :  { %805 = vmatpush1.bf16.msra.mxu0 %v1194_v58  ;;  %844 = vmatpush1.bf16.msra.mxu1 %v1227_v4  ;;  %v186_v58 = vrot.slane %v161_v55, %v185_v57 }
  0x51   :  { %856 = vmatprep.subr.bf16.mxu0 %v1200_v62  ;;  %845 = vmatprep.subr.bf16.mxu1 %v1231_v5  ;;  %v170_v62 = vrot.slane %v161_v55, %v169_v60  ;;  %v173_v5 = vsub.s32 2, %v164_v53 }
  0x53   :  { %807 = vmatmul.mubr.bf16.vlgmr.msra.gmra.mrb[0].mxu0 %v1349_v0 }
  0x54   :  { %857 = vmatpush1.bf16.msra.mxu0 %v1198_v2  ;;  %888 = vmatprep.mubr.bf16.mxu0 %v1342_v35 }
  0x55   :  { %858 = vmatprep.subr.bf16.mxu0 %v1206_v3  ;;  %846 = vmatpush1.bf16.msra.mxu1 %v1233_v8  ;;  %v174_v8 = vrot.slane %v161_v55, %v173_v5 }
  0x56   :  { %1095 = vmatprep.subr.bf16.mxu1 %v1237_v9 }
  0x58   :  { %859 = vmatpush1.bf16.msra.mxu0 %v1204_v6  ;;  %848 = vmatmul.mubr.bf16.vlgmr.msra.gmra.mrb[0].mxu1 %v1349_v0 }
  0x59   :  { %860 = vmatprep.subr.bf16.mxu0 %v1212_v7  ;;  %1096 = vmatpush3.bf16.msra.mxu1 %v1241_v12  ;;  %v177_v7 = vsub.s32 3, %v164_v53 }
  0x5a   :  { %929 = vmatprep.mubr.bf16.mxu1 %v1342_v35  ;;  %1097 = vmatprep.subr.bf16.mxu1 %v1242_v13  ;;  %v1250_v35 = vld [vmem:[#allocation2 + $0x20c] ss:$28 sps:$4 sm:$0xff]  }
  0x5b   :  { %v178_v9 = vrot.slane %v161_v55, %v177_v7 }
  0x5c   :  { %861 = vmatpush1.bf16.msra.mxu0 %v1210_v10 }
  0x5d   :  { %862 = vmatprep.subr.bf16.mxu0 %v1218_v11  ;;  %1098 = vmatpush3.bf16.msra.mxu1 %v1246_v16 }
  0x5e   :  { %1099 = vmatprep.subr.bf16.mxu1 %v1247_v17  ;;  %v189_v17 = vsub.s32 6, %v164_v53 }
  0x60   :  { %863 = vmatpush1.bf16.msra.mxu0 %v1216_v14 }
  0x61   :  { %864 = vmatprep.subr.bf16.mxu0 %v1224_v15  ;;  %1100 = vmatpush3.bf16.msra.mxu1 %v1251_v20 }
  0x62   :  { %1101 = vmatprep.subr.bf16.mxu1 %v1252_v21 }
  0x64   :  { %865 = vmatpush1.bf16.msra.mxu0 %v1222_v18 }
  0x65   :  { %866 = vmatprep.subr.bf16.mxu0 %v1230_v19  ;;  %1102 = vmatpush3.bf16.msra.mxu1 %v1256_v24  ;;  %v190_v19 = vrot.slane %v161_v55, %v189_v17 }
  0x66   :  { %1103 = vmatprep.subr.bf16.mxu1 %v1257_v25 }
  0x68   :  { %867 = vmatpush1.bf16.msra.mxu0 %v1228_v22 }
  0x69   :  { %868 = vmatprep.subr.bf16.mxu0 %v1236_v23  ;;  %1104 = vmatpush3.bf16.msra.mxu1 %v1261_v28 }
  0x6a   :  { %1105 = vmatprep.subr.bf16.mxu1 %v1262_v29 }
  0x6c   :  { %869 = vmatpush1.bf16.msra.mxu0 %v1234_v26 }
  0x6d   :  { %870 = vmatprep.subr.bf16.mxu0 %v1240_v27  ;;  %1106 = vmatpush3.bf16.msra.mxu1 %v1266_v32 }
  0x6e   :  { %1107 = vmatprep.subr.bf16.mxu1 %v1267_v33 }
  0x70   :  { %871 = vmatpush1.bf16.msra.mxu0 %v1238_v30 }
  0x71   :  { %872 = vmatprep.subr.bf16.mxu0 %v1245_v31  ;;  %1108 = vmatpush3.bf16.msra.mxu1 %v1271_v36 }
  0x72   :  { %1109 = vmatprep.subr.bf16.mxu1 %v1272_v37 }
  0x74   :  { %873 = vmatpush1.bf16.msra.mxu0 %v1243_v34 }
  0x75   :  { %874 = vmatprep.subr.bf16.mxu0 %v1250_v35  ;;  %1110 = vmatpush3.bf16.msra.mxu1 %v1276_v40 }
  0x78   :  { %875 = vmatpush1.bf16.msra.mxu0 %v1248_v38  ;;  %930 = vmatmul.mubr.bf16.vlgmr.msra.gmra.mrb[4].mxu1 %v1349_v0 }
  0x79   :  { %876 = vmatprep.subr.bf16.mxu0 %v1255_v39 }
  0x7c   :  { %877 = vmatpush1.bf16.msra.mxu0 %v1253_v41 }
  0x7d   :  { %878 = vmatprep.subr.bf16.mxu0 %v1260_v42 }
  0x80   :  { %879 = vmatpush1.bf16.msra.mxu0 %v1258_v43 }
  0x81   :  { %880 = vmatprep.subr.bf16.mxu0 %v1265_v44 }
  0x84   :  { %881 = vmatpush1.bf16.msra.mxu0 %v1263_v45 }
  0x85   :  { %882 = vmatprep.subr.bf16.mxu0 %v1270_v46 }
  0x88   :  { %883 = vmatpush1.bf16.msra.mxu0 %v1268_v47 }
  0x89   :  { %884 = vmatprep.subr.bf16.mxu0 %v1275_v48 }
  0x8c   :  { %885 = vmatpush1.bf16.msra.mxu0 %v1273_v49 }
  0x8d   :  { %886 = vmatprep.subr.bf16.mxu0 %v1279_v50 }
  0x90   :  { %887 = vmatpush1.bf16.msra.mxu0 %v1277_v51 }
  0x93   :  { %889 = vmatmul.mubr.bf16.vlgmr.msra.gmra.mrb[4].mxu0 %v1349_v0 }
 0x126   :  { %v808_v63 = vpop.f32.mrb[0].mxu0 }
 0x127   :  { %v809_v1 = vadd.f32 %v808_v63, %v166_v61  ;;  %v810_v2 = vpop.f32.mrb[1].mxu0 }
 0x128   :  { %v811_v3 = vadd.f32 %v810_v2, %v170_v62  ;;  %v812_v4 = vpop.f32.mrb[2].mxu0 }
 0x129   :  { %v813_v0 = vpop.f32.mrb[3].mxu0 }
 0x12a   :  { %v1091_v6 = vpack.c.bf16 %v811_v3, %v809_v1 }
 0x12b   :  { %v849_v10 = vpop.f32.mrb[0].mxu1 }
 0x12c   :  { %966 = vst [vmem:[%s1375_s3] sm:$0xff] %v1091_v6  ;;  %v850_v11 = vadd.f32 %v849_v10, %v174_v8  ;;  %v851_v12 = vpop.f32.mrb[1].mxu1 }
 0x12d   :  { %v852_v13 = vadd.f32 %v851_v12, %v178_v9  ;;  %v853_v14 = vpop.f32.mrb[2].mxu1 }
 0x12e   :  { %v854_v15 = vpop.f32.mrb[3].mxu1 }
 0x12f   :  { %v1092_v16 = vpack.c.bf16 %v852_v13, %v850_v11 }
 0x131   :  { %967 = vst [vmem:[%s1375_s3 + $0x8] sm:$0xff] %v1092_v16 }
 0x14b   :  { %v1111_v18 = vpop.f32.mrb[4].mxu1 }
 0x14c   :  { %v1112_v20 = vpop.f32.mrb[5].mxu1 }
 0x14d   :  { %v1113_v21 = vadd.f32 %v1112_v20, %v1111_v18  ;;  %v1114_v22 = vpop.f32.mrb[6].mxu1 }
 0x14e   :  { %v1115_v23 = vpop.f32.mrb[7].mxu1 }
 0x14f   :  { %v932_v24 = vadd.f32 %v1113_v21, %v190_v19 }
 0x151   :  { %v1094_v25 = vpack.c.bf16 %v932_v24, %v932_v24 }
 0x153   :  { %969 = vst [vmem:[%s1375_s3 + $0x18] sm:$0xf] %v1094_v25 }
 0x166   :  { %v890_v26 = vpop.f32.mrb[4].mxu0 }
 0x167   :  { %v891_v27 = vadd.f32 %v890_v26, %v182_v56  ;;  %v892_v28 = vpop.f32.mrb[5].mxu0 }
 0x168   :  { %v893_v29 = vadd.f32 %v892_v28, %v186_v58  ;;  %v894_v30 = vpop.f32.mrb[6].mxu0 }
 0x169   :  { %v895_v31 = vpop.f32.mrb[7].mxu0 }
 0x16a   :  { %v1093_v32 = vpack.c.bf16 %v893_v29, %v891_v27 }
 0x16c   :  { %968 = vst [vmem:[%s1375_s3 + $0x10] sm:$0xff] %v1093_v32 }
 0x16d   :  { %974 = vsyncpa [#allocation3], 1 }

</bundles_post_ra>
